<compile_context>
chip_gen: v5e
topology: v5e:2x2
jax: 0.10.0
libtpu: 0.0.40
codegen_flags: <defaults>
</compile_context>

<pallas_src>
import jax
import jax.numpy as jnp
from jax.experimental import pallas as pl
from jax.experimental.pallas import tpu as pltpu

LN_EPS = 1e-5        # torch.nn.LayerNorm default
LEAKY_SLOPE = 0.01   # torch.nn.LeakyReLU default


# --------------------------------------------------------------------------- #
# Kernel: fused Linear+LReLU  ->  residual (LN -> Linear -> LReLU)  ->  LN+Linear
# --------------------------------------------------------------------------- #

def _ln_normalize(x):
    """LayerNorm without affine (gamma/beta are folded into the next Linear)."""
    h = x.shape[-1]
    inv_h = 1.0 / h
    s = jnp.sum(x, axis=-1, keepdims=True)
    ss = jnp.sum(x * x, axis=-1, keepdims=True)
    mean = s * inv_h
    var = jnp.maximum(ss * inv_h - mean * mean, 0.0)   # clamp: avoid rsqrt(<0)
    return (x - mean) * jax.lax.rsqrt(var + LN_EPS)


def _mlp_kernel(x_ref, w0_ref, b0_ref, w1_ref, b1_ref, w2_ref, b2_ref, o_ref):
    # x_ref : (tm, Din)   input rows (native dtype; upcast to f32 here)
    # w*_ref: bf16 weights, resident in VMEM (constant index_map)
    # b*_ref: (1, N) f32 biases (gamma/beta of the preceding LN already folded in)
    x = x_ref[...].astype(jnp.float32)

    # Layer 0: Linear -> LeakyReLU (bf16 MXU inputs, f32 accumulation).
    y0 = jnp.dot(x.astype(jnp.bfloat16), w0_ref[...],
                 preferred_element_type=jnp.float32) + b0_ref[...]
    h1 = jnp.maximum(y0, LEAKY_SLOPE * y0)

    # _ResBlock: LayerNorm -> Linear -> LeakyReLU, plus skip (all f32 except MXU).
    ln1 = _ln_normalize(h1)
    y1 = jnp.dot(ln1.astype(jnp.bfloat16), w1_ref[...],
                 preferred_element_type=jnp.float32) + b1_ref[...]
    h2 = h1 + jnp.maximum(y1, LEAKY_SLOPE * y1)

    # Final LayerNorm -> Linear (activation = Identity).
    ln2 = _ln_normalize(h2)
    y2 = jnp.dot(ln2.astype(jnp.bfloat16), w2_ref[...],
                 preferred_element_type=jnp.float32) + b2_ref[...]
    o_ref[...] = y2.astype(o_ref.dtype)


# --------------------------------------------------------------------------- #
# Wrapper: tiling / grid choice and parameter folding
# --------------------------------------------------------------------------- #

def _round_up(n, m):
    return (n + m - 1) // m * m


def _cdiv(a, b):
    return -(-a // b)


def _has_two_tensorcores():
    """True on TPU generations with 2 TensorCores per chip (v7x)."""
    try:
        kind = jax.devices()[0].device_kind.lower()
    except Exception:
        return False
    return "v7" in kind


def _choose_grid(R, *, target_tm=512, prefer_even_steps=False):
    """Pick (padded_rows, row_tile, n_steps) with row_tile * n_steps == padded_rows.

    Prefers a step count that exactly divides round_up(R, 8) so host-side
    padding stays <= 7 rows; on 2-TC chips keeps an even (>= 2) step count so
    the parallel grid axis balances across both TensorCores.
    """
    R8 = _round_up(max(R, 8), 8)
    blocks = R8 // 8
    min_steps = 2 if (prefer_even_steps and blocks >= 2) else 1
    want = max(min_steps, _cdiv(R8, target_tm))

    # Preferred: divisor of the sublane-block count near the target step count
    # (row tile between target_tm/2 and target_tm).
    cands = [n for n in range(want, min(blocks, 2 * want) + 1) if blocks % n == 0]
    if prefer_even_steps:
        even = [n for n in cands if n % 2 == 0]
        cands = even or cands
    if cands:
        n_steps = cands[0]
        return R8, R8 // n_steps, n_steps

    # Rare fallback: accept < row_tile rows of padding.
    n_steps = want
    if prefer_even_steps and n_steps > 1 and n_steps % 2:
        n_steps += 1
    tm = _round_up(_cdiv(R8, n_steps), 8)
    return n_steps * tm, tm, n_steps


def _fold_ln_linear(gamma, beta, w, b):
    """Fold LayerNorm affine params into the following Linear (exact algebra)."""
    gamma = gamma.astype(jnp.float32)
    beta = beta.astype(jnp.float32)
    w = w.astype(jnp.float32)
    return gamma[:, None] * w, beta @ w + b.astype(jnp.float32)


def mlp_forward(x, p):
    """Pallas forward of generate_fully_connected([a, a], LeakyReLU, Identity,
    normalization=LayerNorm, res_connection=True).

    x: (..., Din); p holds w0/b0, gamma1/beta1/w1/b1, gamma2/beta2/w2/b2
    (Linear weights stored pre-transposed as (in, out))."""
    orig_shape = x.shape
    din = orig_shape[-1]
    hidden = p["w0"].shape[1]
    dout = p["w2"].shape[1]

    x2d = x.reshape(-1, din)                 # keep native dtype (no HBM upcast copy)
    R = x2d.shape[0]

    target_tm = 1024 if R >= 4096 else 512
    r_pad, tm, n_steps = _choose_grid(
        R, target_tm=target_tm, prefer_even_steps=_has_two_tensorcores())
    if r_pad != R:
        x2d = jnp.pad(x2d, ((0, r_pad - R), (0, 0)))     # usually <= 7 rows

    # Fold LN gamma/beta into the following Linear; cast weights to bf16 (MXU).
    w1f, b1f = _fold_ln_linear(p["gamma1"], p["beta1"], p["w1"], p["b1"])
    w2f, b2f = _fold_ln_linear(p["gamma2"], p["beta2"], p["w2"], p["b2"])
    w0 = p["w0"].astype(jnp.bfloat16)
    w1 = w1f.astype(jnp.bfloat16)
    w2 = w2f.astype(jnp.bfloat16)
    b0 = p["b0"].astype(jnp.float32).reshape(1, hidden)
    b1 = b1f.reshape(1, hidden)
    b2 = b2f.reshape(1, dout)

    out2d = pl.pallas_call(
        _mlp_kernel,
        out_shape=jax.ShapeDtypeStruct((r_pad, dout), x.dtype),
        grid_spec=pltpu.PrefetchScalarGridSpec(
            num_scalar_prefetch=0,
            grid=(n_steps,),
            in_specs=[
                pl.BlockSpec((tm, din), lambda i: (i, 0)),       # x row tile
                pl.BlockSpec((din, hidden), lambda i: (0, 0)),   # W0 (bf16, resident)
                pl.BlockSpec((1, hidden), lambda i: (0, 0)),     # b0
                pl.BlockSpec((hidden, hidden), lambda i: (0, 0)),  # W1' (gamma folded)
                pl.BlockSpec((1, hidden), lambda i: (0, 0)),     # b1'
                pl.BlockSpec((hidden, dout), lambda i: (0, 0)),  # W2' (gamma folded)
                pl.BlockSpec((1, dout), lambda i: (0, 0)),       # b2'
            ],
            out_specs=pl.BlockSpec((tm, dout), lambda i: (i, 0)),
        ),
        compiler_params=pltpu.CompilerParams(
            dimension_semantics=("parallel",),
        ),
    )(x2d, w0, b0, w1, b1, w2, b2)

    if r_pad != R:
        out2d = out2d[:R]
    return out2d.reshape(orig_shape[:-1] + (dout,))


# --------------------------------------------------------------------------- #
# FGNNI forward (glue in XLA, g/f MLPs as the Pallas kernel above)
# --------------------------------------------------------------------------- #

def _fgnni_forward(samples, graphs, params, mlp_fn):
    # TODO(synk): the FGNNI glue (group-mask einsums, embedding broadcast/concat,
    # weighted-graph aggregation) is left to XLA; only the g/f MLPs are Pallas.
    group_mask = params["group_mask"]          # (N, D)
    embeddings = params["embeddings"]          # (N, E)
    w_adj = params["w"]                        # (N, N)
    batch_x = samples.shape[:-1]
    batch_g = graphs.shape[:-2]
    n, e = embeddings.shape

    masked = jnp.einsum("...i,ji->...ji", samples, group_mask)
    emb = jnp.broadcast_to(embeddings, batch_x + (n, e))
    embedded = mlp_fn(jnp.concatenate([masked, emb], axis=-1), params["g"])

    tgt = batch_x + batch_g + embedded.shape[-2:]
    view = batch_x + (1,) * len(batch_g) + embedded.shape[-2:]
    embedded_b = jnp.broadcast_to(embedded.reshape(view), tgt)
    aggr = jnp.einsum("...jk,...jl->...lk", embedded_b, graphs * w_adj)

    e_view = batch_x + (1,) * len(batch_g) + (n, e)
    emb_b = jnp.broadcast_to(emb.reshape(e_view), batch_x + batch_g + (n, e))
    rec = mlp_fn(jnp.concatenate([aggr, emb_b], axis=-1), params["f"])
    return jnp.einsum("...ij,ij->...j", rec, group_mask)


def fgnni_forward(samples, graphs, params):
    return _fgnni_forward(samples, graphs, params, mlp_forward)


# --------------------------------------------------------------------------- #
# Reference (pure JAX, mirrors the kernel's folded-affine + bf16-MXU numerics;
# the gamma/beta fold is an exact algebraic reparametrization of LN -> Linear)
# --------------------------------------------------------------------------- #

def _mlp_reference(x, p):
    out_dtype = x.dtype
    xf = x.astype(jnp.float32)

    def bfmm(a, w):
        return jnp.dot(a.astype(jnp.bfloat16), w.astype(jnp.bfloat16),
                       preferred_element_type=jnp.float32)

    def ln(v):
        mean = jnp.mean(v, axis=-1, keepdims=True)
        var = jnp.maximum(jnp.mean(v * v, axis=-1, keepdims=True) - mean * mean, 0.0)
        return (v - mean) * jax.lax.rsqrt(var + LN_EPS)

    w1f, b1f = _fold_ln_linear(p["gamma1"], p["beta1"], p["w1"], p["b1"])
    w2f, b2f = _fold_ln_linear(p["gamma2"], p["beta2"], p["w2"], p["b2"])

    y0 = bfmm(xf, p["w0"]) + p["b0"]
    h1 = jnp.maximum(y0, LEAKY_SLOPE * y0)
    y1 = bfmm(ln(h1), w1f) + b1f
    h2 = h1 + jnp.maximum(y1, LEAKY_SLOPE * y1)
    y2 = bfmm(ln(h2), w2f) + b2f
    return y2.astype(out_dtype)


def fgnni_reference(samples, graphs, params):
    return _fgnni_forward(samples, graphs, params, _mlp_reference)


# --------------------------------------------------------------------------- #
# Demo / correctness check
# --------------------------------------------------------------------------- #

def _init_mlp(key, din, hidden, dout):
    ks = jax.random.split(key, 10)

    def lin(kw, kb, i, o):
        # torch.nn.Linear stores weight as (out, in); kept pre-transposed (in, out).
        return (jax.random.normal(kw, (i, o), jnp.float32) / jnp.sqrt(i),
                0.01 * jax.random.normal(kb, (o,), jnp.float32))

    w0, b0 = lin(ks[0], ks[1], din, hidden)
    w1, b1 = lin(ks[2], ks[3], hidden, hidden)
    w2, b2 = lin(ks[4], ks[5], hidden, dout)
    return {
        "w0": w0, "b0": b0,
        "gamma1": 1.0 + 0.1 * jax.random.normal(ks[6], (hidden,), jnp.float32),
        "beta1": 0.1 * jax.random.normal(ks[7], (hidden,), jnp.float32),
        "w1": w1, "b1": b1,
        "gamma2": 1.0 + 0.1 * jax.random.normal(ks[8], (hidden,), jnp.float32),
        "beta2": 0.1 * jax.random.normal(ks[9], (hidden,), jnp.float32),
        "w2": w2, "b2": b2,
    }


if __name__ == "__main__":
    # FGNNI defaults: processed_dim_all = 32, embedding_size = 32, out_dim_g = 32,
    # num_nodes = 8  ->  hidden width a = max(4*32, 32, 64) = 128,
    # in_dim_g = in_dim_f = 64.
    num_nodes, d_proc, d_emb, d_g, hidden = 8, 32, 32, 32, 128
    batch_x, batch_g = 4, 2

    key = jax.random.PRNGKey(0)
    keys = jax.random.split(key, 6)

    group_mask = jnp.repeat(jnp.eye(num_nodes, dtype=jnp.float32),
                            d_proc // num_nodes, axis=1)             # (8, 32)
    embeddings = 0.01 * jax.random.normal(keys[0], (num_nodes, d_emb), jnp.float32)
    # The module initializes `w` to zeros; random here so the aggregation path
    # is exercised non-trivially.
    w_adj = jax.random.normal(keys[1], (num_nodes, num_nodes), jnp.float32)

    samples = jax.random.normal(keys[2], (batch_x, d_proc), jnp.float32)
    graphs = (jax.random.uniform(keys[3], (batch_g, num_nodes, num_nodes))
              > 0.5).astype(jnp.float32)

    params = {
        "group_mask": group_mask, "embeddings": embeddings, "w": w_adj,
        "g": _init_mlp(keys[4], d_emb + d_proc, hidden, d_g),
        "f": _init_mlp(keys[5], d_emb + d_g, hidden, d_proc),
    }

    out = jax.block_until_ready(fgnni_forward(samples, graphs, params))
    ref = fgnni_reference(samples, graphs, params)

    assert out.shape == (batch_x, batch_g, d_proc), out.shape
    err = float(jnp.max(jnp.abs(out - ref)))
    assert jnp.allclose(out, ref, atol=2e-3, rtol=2e-3), (
        f"mismatch vs reference: max abs err {err:.3e}")
    print("KERNEL_OK")
</pallas_src>

<mosaic_0001>
module attributes {stable_mosaic.version = 11 : i64} {
  func.func @_mlp_kernel(%arg0: i32, %arg1: memref<32x64xf32, #tpu.memory_space<vmem>>, %arg2: memref<64x128xbf16, #tpu.memory_space<vmem>>, %arg3: memref<1x128xf32, #tpu.memory_space<vmem>>, %arg4: memref<128x128xbf16, #tpu.memory_space<vmem>>, %arg5: memref<1x128xf32, #tpu.memory_space<vmem>>, %arg6: memref<128x32xbf16, #tpu.memory_space<vmem>>, %arg7: memref<1x32xf32, #tpu.memory_space<vmem>>, %arg8: memref<32x32xf32, #tpu.memory_space<vmem>>) attributes {dimension_semantics = [#tpu.dimension_semantics<parallel>], iteration_bounds = array<i64: 1>, scalar_prefetch = 0 : i64, scratch_operands = 0 : i64, tpu.core_type = #tpu.core_type<tc>, window_params = [{transform_indices = @transform_0, window_bounds = array<i64: 32, 64>}, {pipeline_mode = #tpu.pipeline_mode<synchronous>, transform_indices = @transform_1, window_bounds = array<i64: 64, 128>}, {pipeline_mode = #tpu.pipeline_mode<synchronous>, transform_indices = @transform_2, window_bounds = array<i64: 1, 128>}, {pipeline_mode = #tpu.pipeline_mode<synchronous>, transform_indices = @transform_3, window_bounds = array<i64: 128, 128>}, {pipeline_mode = #tpu.pipeline_mode<synchronous>, transform_indices = @transform_4, window_bounds = array<i64: 1, 128>}, {pipeline_mode = #tpu.pipeline_mode<synchronous>, transform_indices = @transform_5, window_bounds = array<i64: 128, 32>}, {pipeline_mode = #tpu.pipeline_mode<synchronous>, transform_indices = @transform_6, window_bounds = array<i64: 1, 32>}, {transform_indices = @transform_7, window_bounds = array<i64: 32, 32>}]} {
    %c0 = arith.constant 0 : index
    %c0_0 = arith.constant 0 : index
    %0 = vector.load %arg1[%c0, %c0_0] : memref<32x64xf32, #tpu.memory_space<vmem>>, vector<32x64xf32>
    %1 = arith.truncf %0 : vector<32x64xf32> to vector<32x64xbf16>
    %c0_1 = arith.constant 0 : index
    %c0_2 = arith.constant 0 : index
    %2 = vector.load %arg2[%c0_1, %c0_2] : memref<64x128xbf16, #tpu.memory_space<vmem>>, vector<64x128xbf16>
    %cst = arith.constant dense<0.000000e+00> : vector<32x128xf32>
    %3 = tpu.matmul %1, %2, %cst {dimension_numbers = #tpu.dot_dimension_numbers<[1], [0], [0], [1], [0, 0, 1, 1], [], []>} : vector<32x64xbf16>, vector<64x128xbf16>, vector<32x128xf32> -> vector<32x128xf32>
    %c0_3 = arith.constant 0 : index
    %c0_4 = arith.constant 0 : index
    %4 = vector.load %arg3[%c0_3, %c0_4] : memref<1x128xf32, #tpu.memory_space<vmem>>, vector<1x128xf32>
    %5 = vector.broadcast %4 : vector<1x128xf32> to vector<32x128xf32>
    %6 = arith.addf %3, %5 : vector<32x128xf32>
    %cst_5 = arith.constant 0.00999999977 : f32
    %7 = vector.broadcast %cst_5 : f32 to vector<32x128xf32>
    %8 = arith.mulf %7, %6 : vector<32x128xf32>
    %9 = arith.maximumf %6, %8 : vector<32x128xf32>
    %cst_6 = arith.constant dense<0.000000e+00> : vector<32xf32>
    %10 = vector.multi_reduction <add>, %9, %cst_6 [1] : vector<32x128xf32> to vector<32xf32>
    %11 = vector.shape_cast %10 : vector<32xf32> to vector<32x1xf32>
    %12 = arith.mulf %9, %9 : vector<32x128xf32>
    %cst_7 = arith.constant dense<0.000000e+00> : vector<32xf32>
    %13 = vector.multi_reduction <add>, %12, %cst_7 [1] : vector<32x128xf32> to vector<32xf32>
    %14 = vector.shape_cast %13 : vector<32xf32> to vector<32x1xf32>
    %cst_8 = arith.constant 7.812500e-03 : f32
    %15 = vector.broadcast %cst_8 : f32 to vector<32x1xf32>
    %16 = arith.mulf %11, %15 : vector<32x1xf32>
    %cst_9 = arith.constant 7.812500e-03 : f32
    %17 = vector.broadcast %cst_9 : f32 to vector<32x1xf32>
    %18 = arith.mulf %14, %17 : vector<32x1xf32>
    %19 = arith.mulf %16, %16 : vector<32x1xf32>
    %20 = arith.subf %18, %19 : vector<32x1xf32>
    %cst_10 = arith.constant 0.000000e+00 : f32
    %21 = vector.broadcast %cst_10 : f32 to vector<32x1xf32>
    %22 = arith.maximumf %20, %21 : vector<32x1xf32>
    %23 = vector.broadcast %16 : vector<32x1xf32> to vector<32x128xf32>
    %24 = arith.subf %9, %23 : vector<32x128xf32>
    %cst_11 = arith.constant 9.99999974E-6 : f32
    %25 = vector.broadcast %cst_11 : f32 to vector<32x1xf32>
    %26 = arith.addf %22, %25 : vector<32x1xf32>
    %27 = math.rsqrt %26 : vector<32x1xf32>
    %28 = vector.broadcast %27 : vector<32x1xf32> to vector<32x128xf32>
    %29 = arith.mulf %24, %28 : vector<32x128xf32>
    %30 = arith.truncf %29 : vector<32x128xf32> to vector<32x128xbf16>
    %c0_12 = arith.constant 0 : index
    %c0_13 = arith.constant 0 : index
    %31 = vector.load %arg4[%c0_12, %c0_13] : memref<128x128xbf16, #tpu.memory_space<vmem>>, vector<128x128xbf16>
    %cst_14 = arith.constant dense<0.000000e+00> : vector<32x128xf32>
    %32 = tpu.matmul %30, %31, %cst_14 {dimension_numbers = #tpu.dot_dimension_numbers<[1], [0], [0], [1], [0, 0, 1, 1], [], []>} : vector<32x128xbf16>, vector<128x128xbf16>, vector<32x128xf32> -> vector<32x128xf32>
    %c0_15 = arith.constant 0 : index
    %c0_16 = arith.constant 0 : index
    %33 = vector.load %arg5[%c0_15, %c0_16] : memref<1x128xf32, #tpu.memory_space<vmem>>, vector<1x128xf32>
    %34 = vector.broadcast %33 : vector<1x128xf32> to vector<32x128xf32>
    %35 = arith.addf %32, %34 : vector<32x128xf32>
    %cst_17 = arith.constant 0.00999999977 : f32
    %36 = vector.broadcast %cst_17 : f32 to vector<32x128xf32>
    %37 = arith.mulf %36, %35 : vector<32x128xf32>
    %38 = arith.maximumf %35, %37 : vector<32x128xf32>
    %39 = arith.addf %9, %38 : vector<32x128xf32>
    %cst_18 = arith.constant dense<0.000000e+00> : vector<32xf32>
    %40 = vector.multi_reduction <add>, %39, %cst_18 [1] : vector<32x128xf32> to vector<32xf32>
    %41 = vector.shape_cast %40 : vector<32xf32> to vector<32x1xf32>
    %42 = arith.mulf %39, %39 : vector<32x128xf32>
    %cst_19 = arith.constant dense<0.000000e+00> : vector<32xf32>
    %43 = vector.multi_reduction <add>, %42, %cst_19 [1] : vector<32x128xf32> to vector<32xf32>
    %44 = vector.shape_cast %43 : vector<32xf32> to vector<32x1xf32>
    %cst_20 = arith.constant 7.812500e-03 : f32
    %45 = vector.broadcast %cst_20 : f32 to vector<32x1xf32>
    %46 = arith.mulf %41, %45 : vector<32x1xf32>
    %cst_21 = arith.constant 7.812500e-03 : f32
    %47 = vector.broadcast %cst_21 : f32 to vector<32x1xf32>
    %48 = arith.mulf %44, %47 : vector<32x1xf32>
    %49 = arith.mulf %46, %46 : vector<32x1xf32>
    %50 = arith.subf %48, %49 : vector<32x1xf32>
    %cst_22 = arith.constant 0.000000e+00 : f32
    %51 = vector.broadcast %cst_22 : f32 to vector<32x1xf32>
    %52 = arith.maximumf %50, %51 : vector<32x1xf32>
    %53 = vector.broadcast %46 : vector<32x1xf32> to vector<32x128xf32>
    %54 = arith.subf %39, %53 : vector<32x128xf32>
    %cst_23 = arith.constant 9.99999974E-6 : f32
    %55 = vector.broadcast %cst_23 : f32 to vector<32x1xf32>
    %56 = arith.addf %52, %55 : vector<32x1xf32>
    %57 = math.rsqrt %56 : vector<32x1xf32>
    %58 = vector.broadcast %57 : vector<32x1xf32> to vector<32x128xf32>
    %59 = arith.mulf %54, %58 : vector<32x128xf32>
    %60 = arith.truncf %59 : vector<32x128xf32> to vector<32x128xbf16>
    %c0_24 = arith.constant 0 : index
    %c0_25 = arith.constant 0 : index
    %61 = vector.load %arg6[%c0_24, %c0_25] : memref<128x32xbf16, #tpu.memory_space<vmem>>, vector<128x32xbf16>
    %cst_26 = arith.constant dense<0.000000e+00> : vector<32x32xf32>
    %62 = tpu.matmul %60, %61, %cst_26 {dimension_numbers = #tpu.dot_dimension_numbers<[1], [0], [0], [1], [0, 0, 1, 1], [], []>} : vector<32x128xbf16>, vector<128x32xbf16>, vector<32x32xf32> -> vector<32x32xf32>
    %c0_27 = arith.constant 0 : index
    %c0_28 = arith.constant 0 : index
    %63 = vector.load %arg7[%c0_27, %c0_28] : memref<1x32xf32, #tpu.memory_space<vmem>>, vector<1x32xf32>
    %64 = vector.broadcast %63 : vector<1x32xf32> to vector<32x32xf32>
    %65 = arith.addf %62, %64 : vector<32x32xf32>
    %c0_29 = arith.constant 0 : index
    %c0_30 = arith.constant 0 : index
    %66 = vector.load %arg8[%c0_29, %c0_30] : memref<32x32xf32, #tpu.memory_space<vmem>>, vector<32x32xf32>
    tpu.vector_store %arg8[%c0_29, %c0_30], %65 {strides = array<i32>} : memref<32x32xf32, #tpu.memory_space<vmem>>, vector<32x32xf32>,
    return
  }
  func.func @transform_0(%arg0: i32) -> (i32, i32) {
    %c0_i32 = arith.constant 0 : i32
    %c0_i32_0 = arith.constant 0 : i32
    return %arg0, %c0_i32 : i32, i32
  }
  func.func @transform_1(%arg0: i32) -> (i32, i32) {
    %c0_i32 = arith.constant 0 : i32
    %c0_i32_0 = arith.constant 0 : i32
    %c0_i32_1 = arith.constant 0 : i32
    return %c0_i32, %c0_i32_0 : i32, i32
  }
  func.func @transform_2(%arg0: i32) -> (i32, i32) {
    %c0_i32 = arith.constant 0 : i32
    %c0_i32_0 = arith.constant 0 : i32
    %c0_i32_1 = arith.constant 0 : i32
    return %c0_i32, %c0_i32_0 : i32, i32
  }
  func.func @transform_3(%arg0: i32) -> (i32, i32) {
    %c0_i32 = arith.constant 0 : i32
    %c0_i32_0 = arith.constant 0 : i32
    %c0_i32_1 = arith.constant 0 : i32
    return %c0_i32, %c0_i32_0 : i32, i32
  }
  func.func @transform_4(%arg0: i32) -> (i32, i32) {
    %c0_i32 = arith.constant 0 : i32
    %c0_i32_0 = arith.constant 0 : i32
    %c0_i32_1 = arith.constant 0 : i32
    return %c0_i32, %c0_i32_0 : i32, i32
  }
  func.func @transform_5(%arg0: i32) -> (i32, i32) {
    %c0_i32 = arith.constant 0 : i32
    %c0_i32_0 = arith.constant 0 : i32
    %c0_i32_1 = arith.constant 0 : i32
    return %c0_i32, %c0_i32_0 : i32, i32
  }
  func.func @transform_6(%arg0: i32) -> (i32, i32) {
    %c0_i32 = arith.constant 0 : i32
    %c0_i32_0 = arith.constant 0 : i32
    %c0_i32_1 = arith.constant 0 : i32
    return %c0_i32, %c0_i32_0 : i32, i32
  }
  func.func @transform_7(%arg0: i32) -> (i32, i32) {
    %c0_i32 = arith.constant 0 : i32
    %c0_i32_0 = arith.constant 0 : i32
    return %arg0, %c0_i32 : i32, i32
  }
}

</mosaic_0001>

<bundles_post_ra>
// kernel: tpu_custom_call.1
= control target key start
LH: loop header
LB: loop body
LE: loop exit
PB: predicated region body
PF: predicated region fallthrough
CT: control target
= control target key end

     0   :  { %12 = vsyncpa [#allocation3], 0  ;;  %s934_s0 = inlined_call_operand.hbm [shape: f32[32,64], index: 0, kind: input, shape index: {}]   ;;  %s935_s1 = inlined_call_operand.hbm [shape: bf16[64,128], index: 1, kind: input, shape index: {}]   ;;  %s936_s2 = inlined_call_operand.vmem [shape: f32[1,128], index: 2, kind: input, shape index: {}]   ;;  %s937_s3 = inlined_call_operand.vmem [shape: bf16[128,128], index: 3, kind: input, shape index: {}]   ;;  %s938_s4 = inlined_call_operand.vmem [shape: f32[1,128], index: 4, kind: input, shape index: {}]   ;;  %s939_s5 = inlined_call_operand.vmem [shape: bf16[128,32], index: 5, kind: input, shape index: {}]   ;;  %s940_s6 = inlined_call_operand.vmem [shape: f32[1,32], index: 6, kind: input, shape index: {}]   ;;  %s941_s7 = inlined_call_operand.hbm [shape: f32[32,32], index: 7, kind: output, shape index: {}]  }
   0x1   :  { %13 = vsyncpa [#allocation6], 0 }
   0x2   :  { %14 = vsyncpa [#allocation4], 0  ;;  %s19_s26 = sshll.u32 %s934_s0, 4  ;;  %s749_s27 = smov [#allocation2]   ;;  %s20_s26 = int_to_ptr.hbm [resolvable:$true] %s19_s26 }
   0x3   :  { %s21_s28 = sshll.u32 %s749_s27, 4  ;;  %s32_s8 = sshll.u32 %s935_s1, 4  ;;  %s22_s28 = int_to_ptr.vmem [resolvable:$true] %s21_s28  ;;  %s33_s8 = int_to_ptr.hbm [resolvable:$true] %s32_s8 }
   0x4   :  { %s750_s9 = smov 128   ;;  %s751_s10 = smov 8  }
   0x5   :  { %27 = dma.hbm_to_vmem [thread:$0]  %s20_s26, 512, %s22_s28, [#allocation3], %s750_s9, %s750_s9, %s751_s10  }
   0x6   :  { %s752_s11 = smov [#allocation5]   ;;  %s753_s13 = smov 64  }
   0x7   :  { %s34_s12 = sshll.u32 %s752_s11, 4  ;;  %s754_s0 = smov 4   ;;  %s35_s12 = int_to_ptr.vmem [resolvable:$true] %s34_s12 }
   0x8   :  { %40 = dma.hbm_to_vmem [thread:$0]  %s33_s8, 512, %s35_s12, [#allocation6], %s753_s13, %s753_s13, %s754_s0  }
   0x9   :  { %743 = dma.done.wait [#allocation3], 512  }
   0xa   :  { %744 = vsyncadd [#allocation3], 4294966784 }
   0xb   :  { %745 = dma.done.wait [#allocation6], 512  }
   0xc   :  { %746 = vsyncadd [#allocation6], 4294966784  ;;  %v620_v0 = vld [vmem:[#allocation5 + $0x18] sm:$0xff]  ;;  %v619_v1 = vld [vmem:[#allocation5 + $0x10] sm:$0xff]  ;;  %vm102_vm0 = vcmask 523264   ;;  %s755_s23 = smov [#allocation7]  }
   0xd   :  { %113 = vmatpush.bf16.msra.mxu0 %v620_v0  ;;  %v618_v2 = vld [vmem:[#allocation5 + $0x8] sm:$0xff]  ;;  %v617_v3 = vld [vmem:[#allocation5] sm:$0xff]  ;;  %v62_v7 = vld [vmem:[#allocation2 + $0x10] sm:$0xff]  ;;  %s519_s24 = sshll.u32 %s755_s23, 4  ;;  %s521_s27 = sshll.u32 %s941_s7, 4  ;;  %s520_s24 = int_to_ptr.vmem [resolvable:$true] %s519_s24  ;;  %s522_s27 = int_to_ptr.hbm [resolvable:$true] %s521_s27 }
   0xe   :  { %v60_v4 = vld [vmem:[#allocation2] sm:$0xff]  ;;  %v61_v5 = vld [vmem:[#allocation2 + $0x8] sm:$0xff]  ;;  %v63_v8 = vld [vmem:[#allocation2 + $0x18] sm:$0xff] }
   0xf   :  { %v64_v6 = vpack.c.bf16 %v61_v5, %v60_v4  ;;  %v65_v9 = vpack.c.bf16 %v63_v8, %v62_v7  ;;  %v652_v10 = vld [vmem:[%s936_s2] ss:$0 sm:$0xff]  ;;  %v628_v31 = vld [vmem:[%s937_s3 + $0x38] sm:$0xff]  ;;  %v627_v32 = vld [vmem:[%s937_s3 + $0x30] sm:$0xff] }
  0x10   :  { %298 = vmatpush.bf16.msra.mxu1 %v628_v31  ;;  %637 = vmatpush.bf16.msra.mxu3 %v628_v31  ;;  %v626_v33 = vld [vmem:[%s937_s3 + $0x28] sm:$0xff]  ;;  %v625_v34 = vld [vmem:[%s937_s3 + $0x20] sm:$0xff]  ;;  %v624_v35 = vld [vmem:[%s937_s3 + $0x18] sm:$0xff] }
  0x11   :  { %114 = vmatpush.bf16.msra.mxu0 %v619_v1  ;;  %v623_v36 = vld [vmem:[%s937_s3 + $0x10] sm:$0xff]  ;;  %v622_v38 = vld [vmem:[%s937_s3 + $0x8] sm:$0xff]  ;;  %v621_v43 = vld [vmem:[%s937_s3] sm:$0xff] }
  0x14   :  { %299 = vmatpush.bf16.msra.mxu1 %v627_v32  ;;  %638 = vmatpush.bf16.msra.mxu3 %v627_v32 }
  0x15   :  { %115 = vmatpush.bf16.msra.mxu0 %v618_v2 }
  0x18   :  { %300 = vmatpush.bf16.msra.mxu1 %v626_v33  ;;  %639 = vmatpush.bf16.msra.mxu3 %v626_v33 }
  0x19   :  { %116 = vmatpush.bf16.msra.mxu0 %v617_v3 }
  0x1c   :  { %551 = vmatmul.msk.bf16.vlgmr.msra.gmra.mxu0 %vm102_vm0, %v64_v6  ;;  %301 = vmatpush.bf16.msra.mxu1 %v625_v34 }
  0x1d   :  { %640 = vmatpush.bf16.msra.mxu3 %v625_v34 }
  0x20   :  { %302 = vmatpush.bf16.msra.mxu1 %v624_v35 }
  0x21   :  { %641 = vmatpush.bf16.msra.mxu3 %v624_v35 }
  0x24   :  { %303 = vmatpush.bf16.msra.mxu1 %v623_v36 }
  0x25   :  { %642 = vmatpush.bf16.msra.mxu3 %v623_v36 }
  0x28   :  { %304 = vmatpush.bf16.msra.mxu1 %v622_v38 }
  0x29   :  { %643 = vmatpush.bf16.msra.mxu3 %v622_v38 }
  0x2c   :  { %552 = vmatmul.msk.bf16.gmra.mxu0 %vm102_vm0, %v65_v9  ;;  %305 = vmatpush.bf16.msra.mxu1 %v621_v43 }
  0x2d   :  { %644 = vmatpush.bf16.msra.mxu3 %v621_v43 }
  0x99   :  { %v118_v11 = vpop.f32.mrf.mxu0 }
  0x9a   :  { %v119_v12 = vadd.f32 %v652_v10, %v118_v11 }
  0x9c   :  { %v128_v13 = vmul.f32 0.01, %v119_v12 }
  0x9e   :  { %v808_v14 = vmax.f32 %v119_v12, %v128_v13 }
  0xa0   :  { %136 = vadd.xlane.f32.xlu0 %v808_v14  ;;  %v144_v15 = vmul.f32 %v808_v14, %v808_v14 }
  0xa1   :  { %v120_v16 = vpop.f32.mrf.mxu0 }
  0xa2   :  { %v121_v17 = vadd.f32 %v652_v10, %v120_v16  ;;  %148 = vadd.xlane.f32.xlu1 %v144_v15 }
  0xa4   :  { %v129_v18 = vmul.f32 0.01, %v121_v17 }
  0xa6   :  { %v813_v19 = vmax.f32 %v121_v17, %v129_v18 }
  0xa8   :  { %138 = vadd.xlane.f32.xlu0 %v813_v19  ;;  %v145_v20 = vmul.f32 %v813_v19, %v813_v19 }
  0xa9   :  { %v123_v21 = vpop.f32.mrf.mxu0 }
  0xaa   :  { %v124_v22 = vadd.f32 %v652_v10, %v123_v21  ;;  %150 = vadd.xlane.f32.xlu1 %v145_v20 }
  0xac   :  { %v130_v23 = vmul.f32 0.01, %v124_v22 }
  0xae   :  { %v818_v24 = vmax.f32 %v124_v22, %v130_v23 }
  0xb0   :  { %140 = vadd.xlane.f32.xlu2 %v818_v24  ;;  %v146_v25 = vmul.f32 %v818_v24, %v818_v24 }
  0xb1   :  { %v125_v26 = vpop.f32.mrf.mxu0 }
  0xb2   :  { %v126_v27 = vadd.f32 %v652_v10, %v125_v26  ;;  %152 = vadd.xlane.f32.xlu0 %v146_v25 }
  0xb4   :  { %v131_v28 = vmul.f32 0.01, %v126_v27 }
  0xb6   :  { %v823_v29 = vmax.f32 %v126_v27, %v131_v28 }
  0xb8   :  { %142 = vadd.xlane.f32.xlu2 %v823_v29  ;;  %v147_v30 = vmul.f32 %v823_v29, %v823_v29 }
  0xba   :  { %154 = vadd.xlane.f32.xlu1 %v147_v30 }
 0x113   :  { %v137_v37 = vpop.xlane.xlu0 %136 }
 0x114   :  { %v849_v39 = vmul.f32 0.0078125, %v137_v37 }
 0x115   :  { %v149_v40 = vpop.xlane.xlu1 %148 }
 0x116   :  { %v164_v41 = vmul.f32 %v849_v39, %v849_v39  ;;  %v160_v42 = vmul.f32 0.0078125, %v149_v40  ;;  %v176_v25 = vsub.f32 %v808_v14, %v849_v39 }
 0x118   :  { %v168_v44 = vsub.f32 %v160_v42, %v164_v41 }
 0x11a   :  { %v172_v45 = vmax.f32 %v168_v44, 0.0 }
 0x11b   :  { %v139_v46 = vpop.xlane.xlu0 %138 }
 0x11c   :  { %v180_v47 = vadd.f32 1e-05, %v172_v45  ;;  %v157_v48 = vmul.f32 0.0078125, %v139_v46 }
 0x11d   :  { %v151_v49 = vpop.xlane.xlu1 %150 }
 0x11e   :  { %655 = vrsqrt.f32 %v180_v47  ;;  %v165_v50 = vmul.f32 %v157_v48, %v157_v48  ;;  %v161_v51 = vmul.f32 0.0078125, %v151_v49  ;;  %vm190_vm2 = vweird.f32 %v180_v47  ;;  %v653_v49 = vld [vmem:[%s938_s4] ss:$0 sm:$0xff] }
 0x11f   :  { %v177_v26 = vsub.f32 %v813_v19, %v157_v48 }
 0x120   :  { %v169_v52 = vsub.f32 %v161_v51, %v165_v50 }
 0x122   :  { %v173_v53 = vmax.f32 %v169_v52, 0.0 }
 0x123   :  { %v141_v54 = vpop.xlane.xlu2 %140 }
 0x124   :  { %v656_v55 = vpop.eup %655  ;;  %v181_v56 = vadd.f32 1e-05, %v173_v53  ;;  %v856_v57 = vmul.f32 0.0078125, %v141_v54 }
 0x125   :  { %v185_v58 = vmul.f32 %v656_v55, %v180_v47  ;;  %v153_v59 = vpop.xlane.xlu0 %152  ;;  %vm191_vm1 = vweird.f32 %v656_v55 }
 0x126   :  { %657 = vrsqrt.f32 %v181_v56  ;;  %v166_v60 = vmul.f32 %v856_v57, %v856_v57  ;;  %v162_v61 = vmul.f32 0.0078125, %v153_v59  ;;  %vm192_vm4 = vmor %vm190_vm2, %vm191_vm1  ;;  %vm200_vm5 = vweird.f32 %v181_v56 }
 0x127   :  { %v186_v62 = vmul.f32 %v656_v55, %v185_v58  ;;  %v178_v43 = vsub.f32 %v818_v24, %v856_v57 }
 0x128   :  { %v170_v63 = vsub.f32 %v162_v61, %v166_v60 }
 0x129   :  { %v187_v0 = vmul.f32 0.5, %v186_v62 }
 0x12a   :  { %v174_v1 = vmax.f32 %v170_v63, 0.0 }
 0x12b   :  { %v143_v2 = vpop.xlane.xlu2 %142  ;;  %v188_v8 = vsub.f32 1.5, %v187_v0 }
 0x12c   :  { %v658_v3 = vpop.eup %657  ;;  %v182_v4 = vadd.f32 1e-05, %v174_v1  ;;  %v159_v5 = vmul.f32 0.0078125, %v143_v2 }
 0x12d   :  { %v195_v6 = vmul.f32 %v658_v3, %v181_v56  ;;  %v155_v7 = vpop.xlane.xlu1 %154  ;;  %v189_v15 = vmul.f32 %v656_v55, %v188_v8  ;;  %vm201_vm3 = vweird.f32 %v658_v3  ;;  %v635_v8 = vld [vmem:[%s939_s5 + $0x30] sm:$0xff] }
 0x12e   :  { %659 = vrsqrt.f32 %v182_v4  ;;  %v167_v9 = vmul.f32 %v159_v5, %v159_v5  ;;  %v163_v10 = vmul.f32 0.0078125, %v155_v7  ;;  %vm202_vm6 = vmor %vm200_vm5, %vm201_vm3  ;;  %vm210_vm8 = vweird.f32 %v182_v4 }
 0x12f   :  { %v196_v11 = vmul.f32 %v658_v3, %v195_v6  ;;  %v193_v22 = vsel %vm192_vm4, %v656_v55, %v189_v15  ;;  %v179_v44 = vsub.f32 %v823_v29, %v159_v5  ;;  %v630_v15 = vld [vmem:[%s939_s5 + $0x8] sm:$0xff] }
 0x130   :  { %v171_v12 = vsub.f32 %v163_v10, %v167_v9  ;;  %v224_v30 = vmul.f32 %v193_v22, %v176_v25  ;;  %v633_v9 = vld [vmem:[%s939_s5 + $0x20] sm:$0xff]  ;;  %v632_v10 = vld [vmem:[%s939_s5 + $0x18] sm:$0xff] }
 0x131   :  { %v197_v13 = vmul.f32 0.5, %v196_v11  ;;  %v631_v11 = vld [vmem:[%s939_s5 + $0x10] sm:$0xff] }
 0x132   :  { %v175_v16 = vmax.f32 %v171_v12, 0.0 }
 0x133   :  { %v198_v17 = vsub.f32 1.5, %v197_v13 }
 0x134   :  { %v660_v18 = vpop.eup %659  ;;  %v183_v20 = vadd.f32 1e-05, %v175_v16 }
 0x135   :  { %v205_v21 = vmul.f32 %v660_v18, %v182_v4  ;;  %v199_v23 = vmul.f32 %v658_v3, %v198_v17  ;;  %vm211_vm7 = vweird.f32 %v660_v18 }
 0x136   :  { %661 = vrsqrt.f32 %v183_v20  ;;  %vm212_vm10 = vmor %vm210_vm8, %vm211_vm7  ;;  %vm220_vm11 = vweird.f32 %v183_v20 }
 0x137   :  { %v206_v27 = vmul.f32 %v660_v18, %v205_v21  ;;  %v203_v28 = vsel %vm202_vm6, %v658_v3, %v199_v23  ;;  %v629_v21 = vld [vmem:[%s939_s5] sm:$0xff] }
 0x138   :  { %v225_v31 = vmul.f32 %v203_v28, %v177_v26 }
 0x139   :  { %v207_v32 = vmul.f32 0.5, %v206_v27 }
 0x13a   :  { %v228_v33 = vpack.c.bf16 %v225_v31, %v224_v30 }
 0x13b   :  { %v208_v36 = vsub.f32 1.5, %v207_v32 }
 0x13c   :  { %v662_v34 = vpop.eup %661  ;;  %306 = vmatmul.bf16.vlgmr.msra.gmra.mxu1 %v228_v33 }
 0x13d   :  { %v215_v35 = vmul.f32 %v662_v34, %v183_v20  ;;  %v209_v40 = vmul.f32 %v660_v18, %v208_v36  ;;  %vm221_vm9 = vweird.f32 %v662_v34 }
 0x13e   :  { %vm222_vm12 = vmor %vm220_vm11, %vm221_vm9  ;;  %vm510_vm9 = vcmask 261120  }
 0x13f   :  { %v216_v37 = vmul.f32 %v662_v34, %v215_v35  ;;  %v213_v41 = vsel %vm212_vm10, %v660_v18, %v209_v40 }
 0x140   :  { %v226_v46 = vmul.f32 %v213_v41, %v178_v43 }
 0x141   :  { %v217_v38 = vmul.f32 0.5, %v216_v37 }
 0x143   :  { %v218_v39 = vsub.f32 1.5, %v217_v38 }
 0x145   :  { %v219_v42 = vmul.f32 %v662_v34, %v218_v39 }
 0x147   :  { %v223_v45 = vsel %vm222_vm12, %v662_v34, %v219_v42 }
 0x148   :  { %v227_v47 = vmul.f32 %v223_v45, %v179_v44 }
 0x14a   :  { %v229_v48 = vpack.c.bf16 %v227_v47, %v226_v46 }
 0x14c   :  { %311 = vmatmul.bf16.vlgmr.msra.gmra.mxu3 %v229_v48 }
 0x1b9   :  { %v307_v50 = vpop.f32.mrf.mxu1 }
 0x1ba   :  { %v308_v51 = vadd.f32 %v653_v49, %v307_v50 }
 0x1bc   :  { %v317_v52 = vmul.f32 0.01, %v308_v51 }
 0x1be   :  { %v321_v53 = vmax.f32 %v308_v51, %v317_v52 }
 0x1c0   :  { %v870_v54 = vadd.f32 %v321_v53, %v808_v14 }
 0x1c1   :  { %v309_v55 = vpop.f32.mrf.mxu1 }
 0x1c2   :  { %v310_v56 = vadd.f32 %v653_v49, %v309_v55  ;;  %329 = vadd.xlane.f32.xlu2 %v870_v54  ;;  %v337_v57 = vmul.f32 %v870_v54, %v870_v54 }
 0x1c4   :  { %v318_v58 = vmul.f32 0.01, %v310_v56  ;;  %341 = vadd.xlane.f32.xlu1 %v337_v57 }
 0x1c6   :  { %v322_v59 = vmax.f32 %v310_v56, %v318_v58 }
 0x1c8   :  { %v876_v60 = vadd.f32 %v322_v59, %v813_v19 }
 0x1ca   :  { %331 = vadd.xlane.f32.xlu0 %v876_v60  ;;  %v338_v61 = vmul.f32 %v876_v60, %v876_v60 }
 0x1cc   :  { %343 = vadd.xlane.f32.xlu2 %v338_v61 }
 0x1cf   :  { %v312_v14 = vpop.f32.mrf.mxu3 }
 0x1d0   :  { %v313_v62 = vadd.f32 %v653_v49, %v312_v14 }
 0x1d2   :  { %v319_v63 = vmul.f32 0.01, %v313_v62 }
 0x1d4   :  { %v323_v0 = vmax.f32 %v313_v62, %v319_v63 }
 0x1d6   :  { %v882_v1 = vadd.f32 %v323_v0, %v818_v24  ;;  %v636_v24 = vld [vmem:[%s939_s5 + $0x38] sm:$0xff] }
 0x1d7   :  { %v314_v2 = vpop.f32.mrf.mxu3  ;;  %491 = vmatpush.bf16.msra.mxu2 %v636_v24 }
 0x1d8   :  { %v315_v3 = vadd.f32 %v653_v49, %v314_v2  ;;  %333 = vadd.xlane.f32.xlu0 %v882_v1  ;;  %v339_v19 = vmul.f32 %v882_v1, %v882_v1 }
 0x1da   :  { %v320_v4 = vmul.f32 0.01, %v315_v3  ;;  %345 = vadd.xlane.f32.xlu2 %v339_v19 }
 0x1db   :  { %492 = vmatpush.bf16.msra.mxu2 %v635_v8 }
 0x1dc   :  { %v324_v5 = vmax.f32 %v315_v3, %v320_v4 }
 0x1de   :  { %v888_v6 = vadd.f32 %v324_v5, %v823_v29  ;;  %v634_v29 = vld [vmem:[%s939_s5 + $0x28] sm:$0xff] }
 0x1df   :  { %493 = vmatpush.bf16.msra.mxu2 %v634_v29 }
 0x1e0   :  { %335 = vadd.xlane.f32.xlu1 %v888_v6  ;;  %v340_v7 = vmul.f32 %v888_v6, %v888_v6 }
 0x1e2   :  { %347 = vadd.xlane.f32.xlu0 %v340_v7 }
 0x1e3   :  { %494 = vmatpush.bf16.msra.mxu2 %v633_v9 }
 0x1e7   :  { %495 = vmatpush.bf16.msra.mxu2 %v632_v10 }
 0x1eb   :  { %496 = vmatpush.bf16.msra.mxu2 %v631_v11 }
 0x1ef   :  { %497 = vmatpush.bf16.msra.mxu2 %v630_v15 }
 0x1f3   :  { %498 = vmatpush.bf16.msra.mxu2 %v629_v21 }
 0x235   :  { %v330_v12 = vpop.xlane.xlu2 %329 }
 0x236   :  { %v349_v13 = vmul.f32 0.0078125, %v330_v12 }
 0x237   :  { %v342_v16 = vpop.xlane.xlu1 %341 }
 0x238   :  { %v357_v17 = vmul.f32 %v349_v13, %v349_v13  ;;  %v353_v18 = vmul.f32 0.0078125, %v342_v16  ;;  %v369_v14 = vsub.f32 %v870_v54, %v349_v13 }
 0x23a   :  { %v361_v20 = vsub.f32 %v353_v18, %v357_v17 }
 0x23c   :  { %v365_v22 = vmax.f32 %v361_v20, 0.0 }
 0x23d   :  { %v332_v23 = vpop.xlane.xlu0 %331 }
 0x23e   :  { %v373_v25 = vadd.f32 1e-05, %v365_v22  ;;  %v350_v26 = vmul.f32 0.0078125, %v332_v23 }
 0x23f   :  { %v344_v27 = vpop.xlane.xlu2 %343 }
 0x240   :  { %663 = vrsqrt.f32 %v373_v25  ;;  %v358_v28 = vmul.f32 %v350_v26, %v350_v26  ;;  %v354_v30 = vmul.f32 0.0078125, %v344_v27  ;;  %vm383_vm14 = vweird.f32 %v373_v25 }
 0x241   :  { %v370_v62 = vsub.f32 %v876_v60, %v350_v26 }
 0x242   :  { %v362_v31 = vsub.f32 %v354_v30, %v358_v28 }
 0x244   :  { %v366_v32 = vmax.f32 %v362_v31, 0.0 }
 0x246   :  { %v664_v33 = vpop.eup %663  ;;  %v374_v34 = vadd.f32 1e-05, %v366_v32 }
 0x247   :  { %v378_v35 = vmul.f32 %v664_v33, %v373_v25  ;;  %vm384_vm13 = vweird.f32 %v664_v33  ;;  %v654_v25 = vld [vmem:[%s940_s6] ss:$0 sm:$0xff] }
 0x248   :  { %665 = vrsqrt.f32 %v374_v34  ;;  %vm385_vm0 = vmor %vm383_vm14, %vm384_vm13  ;;  %vm393_vm1 = vweird.f32 %v374_v34 }
 0x249   :  { %v379_v36 = vmul.f32 %v664_v33, %v378_v35 }
 0x24b   :  { %v380_v37 = vmul.f32 0.5, %v379_v36  ;;  %v334_v38 = vpop.xlane.xlu0 %333 }
 0x24c   :  { %v351_v40 = vmul.f32 0.0078125, %v334_v38 }
 0x24d   :  { %v346_v39 = vpop.xlane.xlu2 %345  ;;  %v381_v45 = vsub.f32 1.5, %v380_v37 }
 0x24e   :  { %v666_v41 = vpop.eup %665  ;;  %v359_v42 = vmul.f32 %v351_v40, %v351_v40  ;;  %v355_v43 = vmul.f32 0.0078125, %v346_v39  ;;  %v371_v17 = vsub.f32 %v882_v1, %v351_v40 }
 0x24f   :  { %v388_v44 = vmul.f32 %v666_v41, %v374_v34  ;;  %v382_v51 = vmul.f32 %v664_v33, %v381_v45  ;;  %vm394_vm15 = vweird.f32 %v666_v41 }
 0x250   :  { %v363_v46 = vsub.f32 %v355_v43, %v359_v42  ;;  %vm395_vm2 = vmor %vm393_vm1, %vm394_vm15 }
 0x251   :  { %v389_v47 = vmul.f32 %v666_v41, %v388_v44  ;;  %v386_v59 = vsel %vm385_vm0, %v664_v33, %v382_v51 }
 0x252   :  { %v367_v48 = vmax.f32 %v363_v46, 0.0  ;;  %v417_v2 = vmul.f32 %v386_v59, %v369_v14 }
 0x253   :  { %v390_v49 = vmul.f32 0.5, %v389_v47  ;;  %v336_v50 = vpop.xlane.xlu1 %335 }
 0x254   :  { %v375_v52 = vadd.f32 1e-05, %v367_v48  ;;  %v352_v53 = vmul.f32 0.0078125, %v336_v50 }
 0x255   :  { %v348_v55 = vpop.xlane.xlu0 %347  ;;  %v391_v56 = vsub.f32 1.5, %v390_v49 }
 0x256   :  { %667 = vrsqrt.f32 %v375_v52  ;;  %v360_v57 = vmul.f32 %v352_v53, %v352_v53  ;;  %v356_v58 = vmul.f32 0.0078125, %v348_v55  ;;  %vm403_vm4 = vweird.f32 %v375_v52 }
 0x257   :  { %v392_v61 = vmul.f32 %v666_v41, %v391_v56  ;;  %v372_v18 = vsub.f32 %v888_v6, %v352_v53 }
 0x258   :  { %v364_v63 = vsub.f32 %v356_v58, %v360_v57 }
 0x259   :  { %v396_v0 = vsel %vm395_vm2, %v666_v41, %v392_v61 }
 0x25a   :  { %v418_v3 = vmul.f32 %v396_v0, %v370_v62  ;;  %v368_v19 = vmax.f32 %v364_v63, 0.0 }
 0x25c   :  { %v668_v4 = vpop.eup %667  ;;  %v421_v5 = vpack.c.bf16 %v418_v3, %v417_v2  ;;  %v376_v24 = vadd.f32 1e-05, %v368_v19 }
 0x25d   :  { %v398_v7 = vmul.f32 %v668_v4, %v375_v52  ;;  %vm404_vm3 = vweird.f32 %v668_v4 }
 0x25e   :  { %499 = vmatmul.bf16.vlgmr.msra.gmra.mxu2 %v421_v5  ;;  %669 = vrsqrt.f32 %v376_v24  ;;  %vm405_vm6 = vmor %vm403_vm4, %vm404_vm3  ;;  %vm413_vm7 = vweird.f32 %v376_v24 }
 0x25f   :  { %v399_v8 = vmul.f32 %v668_v4, %v398_v7 }
 0x261   :  { %v400_v29 = vmul.f32 0.5, %v399_v8 }
 0x263   :  { %v401_v10 = vsub.f32 1.5, %v400_v29 }
 0x264   :  { %v670_v9 = vpop.eup %669 }
 0x265   :  { %v408_v11 = vmul.f32 %v670_v9, %v376_v24  ;;  %v402_v60 = vmul.f32 %v668_v4, %v401_v10  ;;  %vm414_vm5 = vweird.f32 %v670_v9 }
 0x266   :  { %vm415_vm8 = vmor %vm413_vm7, %vm414_vm5 }
 0x267   :  { %v409_v54 = vmul.f32 %v670_v9, %v408_v11  ;;  %v406_v15 = vsel %vm405_vm6, %v668_v4, %v402_v60 }
 0x268   :  { %v419_v21 = vmul.f32 %v406_v15, %v371_v17 }
 0x269   :  { %v410_v12 = vmul.f32 0.5, %v409_v54 }
 0x26b   :  { %v411_v13 = vsub.f32 1.5, %v410_v12 }
 0x26d   :  { %v412_v16 = vmul.f32 %v670_v9, %v411_v13 }
 0x26f   :  { %v416_v20 = vsel %vm415_vm8, %v670_v9, %v412_v16 }
 0x270   :  { %v420_v22 = vmul.f32 %v416_v20, %v372_v18 }
 0x272   :  { %v422_v23 = vpack.c.bf16 %v420_v22, %v419_v21 }
 0x274   :  { %504 = vmatmul.bf16.gmra.mxu2 %v422_v23 }
 0x2e1   :  { %v500_v26 = vpop.f32.mrf.mxu2 }
 0x2e2   :  { %v501_v27 = vadd.f32 %v654_v25, %v500_v26 }
 0x2e4   :  { %511 = vst.msk [vmem:[#allocation7] sm:$0xff] %vm510_vm9, %v501_v27 }
 0x2e9   :  { %v502_v28 = vpop.f32.mrf.mxu2 }
 0x2ea   :  { %v503_v30 = vadd.f32 %v654_v25, %v502_v28 }
 0x2ec   :  { %512 = vst.msk [vmem:[#allocation7 + $0x8] sm:$0xff] %vm510_vm9, %v503_v30 }
 0x2f7   :  { %v505_v1 = vpop.f32.mrf.mxu2 }
 0x2f8   :  { %v506_v6 = vadd.f32 %v654_v25, %v505_v1 }
 0x2fa   :  { %513 = vst.msk [vmem:[#allocation7 + $0x10] sm:$0xff] %vm510_vm9, %v506_v6 }
 0x2ff   :  { %v507_v31 = vpop.f32.mrf.mxu2 }
 0x300   :  { %v508_v32 = vadd.f32 %v654_v25, %v507_v31 }
 0x302   :  { %514 = vst.msk [vmem:[#allocation7 + $0x18] sm:$0xff] %vm510_vm9, %v508_v32 }
 0x303   :  { %527 = dma.vmem_to_hbm [thread:$0]  %s520_s24, 512, %s522_s27, [#allocation4], %s750_s9, %s750_s9, %s751_s10  }
 0x304   :  { %747 = dma.done.wait [#allocation4], 512  }
 0x305   :  { %748 = vsyncadd [#allocation4], 4294966784 }
 0x306   :  { %532 = vsyncpa [#allocation3], 1 }
 0x307   :  { %533 = vsyncpa [#allocation6], 1 }
 0x308   :  { %534 = vsyncpa [#allocation4], 1 }

</bundles_post_ra>
